<compile_context>
chip_gen: v5e
topology: v5e:2x2
jax: 0.10.0
libtpu: 0.0.40
codegen_flags: <defaults>
</compile_context>

<pallas_src>
import functools

import jax
import jax.numpy as jnp
from jax.experimental import pallas as pl
from jax.experimental.pallas import tpu as pltpu

K_IN = 28 * 28      # 784 input features (kept unpadded)
H = 64              # hidden features (algebraically fused away)
N_OUT = 10          # real output classes
N_PAD = 128         # lane-dense padded output width (unmasked vst)


def _round_up(n, m):
    return ((n + m - 1) // m) * m


def linear_hidden_kernel(x_ref, w_ref, o_ref):
    # f32 -> bf16 cast of the activation tile on the VPU (hidden under the DMA
    # of the next tile); single (tm,784)@(784,128) MXU matmul, f32 accumulate,
    # lane-dense bf16 store.
    x = x_ref[...].astype(w_ref.dtype)
    o_ref[...] = jnp.dot(x, w_ref[...],
                         preferred_element_type=jnp.float32).astype(o_ref.dtype)


def prepare_params(w1, w2, dtype=jnp.bfloat16):
    """Hoisted out of the hot path (runs once).

    fc2(fc1(x)) = x @ w1.T @ w2.T = x @ (w2 @ w1).T, so the two bias-free
    linear layers fuse into one (784, 10) matrix computed in f32, then
    zero-padded to (784, 128) lanes and cast to bf16.
    """
    w_fused = (w2.astype(jnp.float32) @ w1.astype(jnp.float32)).T        # (784, 10)
    return jnp.zeros((K_IN, N_PAD), dtype).at[:, :N_OUT].set(w_fused.astype(dtype))


@functools.partial(jax.jit, static_argnames=("block_m",))
def linear_hidden_forward(x, w_fused, *, block_m=1024):
    """x: (B, 784) f32.  w_fused: (784, 128) bf16 from prepare_params.  -> (B, 10) f32."""
    B = x.shape[0]

    # Tile-count-first so batch padding never exceeds 8 rows per tile; force an
    # even number (>=2) of tiles for B >= 64 so the "parallel" batch axis
    # actually splits across both v7x TensorCores.
    num_tiles = max(1, pl.cdiv(B, block_m))
    if B >= 64:
        num_tiles = max(num_tiles, 2)
        num_tiles += num_tiles % 2
    tm = _round_up(pl.cdiv(B, num_tiles), 8)

    rows = B
    if tm > rows:                       # only when B < 8: tiny zero-fill so the
        x = jnp.zeros((tm, K_IN), x.dtype).at[:rows].set(x)   # block fits the array
        rows = tm
    # No K-padding / pre-cast of x; ragged last tile (num_tiles*tm > rows) is
    # handled by Pallas block clipping, and those rows are sliced off below.

    cost = pl.CostEstimate(
        flops=2 * num_tiles * tm * K_IN * N_PAD,
        transcendentals=0,
        bytes_accessed=(rows * K_IN * 4            # x  (f32, read once)
                        + K_IN * N_PAD * 2         # fused weights (bf16)
                        + rows * N_PAD * 2),       # output (bf16)
    )

    out = pl.pallas_call(
        linear_hidden_kernel,
        out_shape=jax.ShapeDtypeStruct((rows, N_PAD), jnp.bfloat16),
        grid_spec=pltpu.PrefetchScalarGridSpec(
            num_scalar_prefetch=0,
            grid=(num_tiles,),
            in_specs=[
                # x: one (tm, 784) f32 tile per grid step -> pipelined DMA.
                pl.BlockSpec((tm, K_IN), lambda i: (i, 0)),
                # Fused weights: constant block index -> VMEM-resident, DMA'd once.
                pl.BlockSpec((K_IN, N_PAD), lambda i: (0, 0)),
            ],
            out_specs=pl.BlockSpec((tm, N_PAD), lambda i: (i, 0)),
        ),
        compiler_params=pltpu.CompilerParams(
            dimension_semantics=("parallel",)),    # batch tiles are independent
        cost_estimate=cost,
    )(x, w_fused)

    return out[:B, :N_OUT].astype(jnp.float32)


if __name__ == "__main__":
    key = jax.random.PRNGKey(0)
    kx, k1, k2 = jax.random.split(key, 3)

    # PyTorch nn.Linear layout: (out_features, in_features), both bias=False.
    w1 = jax.random.normal(k1, (H, K_IN), dtype=jnp.float32) * 0.02
    w2 = jax.random.normal(k2, (N_OUT, H), dtype=jnp.float32) * 0.05
    w_fused = prepare_params(w1, w2)

    # Emulated-kernel reference (same bf16 roundings of x / fused weights,
    # f32 accumulation), plus the pure-f32 PyTorch reference.
    wf_rounded = ((w2 @ w1).T).astype(jnp.bfloat16).astype(jnp.float32)   # (784, 10)

    # Check the single-tile path (B=8) and the multi-tile / ragged-last-tile
    # path (B=600 -> 2 tiles of 304 rows, last tile partially filled).
    for B in (8, 600):
        x = jax.random.normal(jax.random.fold_in(kx, B), (B, K_IN), dtype=jnp.float32)
        out = linear_hidden_forward(x, w_fused)
        jax.block_until_ready(out)
        assert out.shape == (B, N_OUT) and out.dtype == jnp.float32

        ref_emul = x.astype(jnp.bfloat16).astype(jnp.float32) @ wf_rounded
        assert jnp.allclose(out, ref_emul, atol=5e-3, rtol=5e-3), "bf16-consistent check failed"

        ref32 = (x @ w1.T) @ w2.T       # pure-f32 PyTorch semantics
        assert jnp.allclose(out, ref32, atol=3e-2, rtol=3e-2), "f32 reference check failed"

    print("KERNEL_OK")
</pallas_src>

<mosaic_0001>
module attributes {stable_mosaic.version = 11 : i64} {
  func.func @linear_hidden_kernel(%arg0: i32, %arg1: memref<8x784xf32, #tpu.memory_space<vmem>>, %arg2: memref<784x128xbf16, #tpu.memory_space<vmem>>, %arg3: memref<8x128xbf16, #tpu.memory_space<vmem>>) attributes {dimension_semantics = [#tpu.dimension_semantics<parallel>], iteration_bounds = array<i64: 1>, scalar_prefetch = 0 : i64, scratch_operands = 0 : i64, tpu.core_type = #tpu.core_type<tc>, window_params = [{transform_indices = @transform_0, window_bounds = array<i64: 8, 784>}, {pipeline_mode = #tpu.pipeline_mode<synchronous>, transform_indices = @transform_1, window_bounds = array<i64: 784, 128>}, {transform_indices = @transform_2, window_bounds = array<i64: 8, 128>}]} {
    %c0 = arith.constant 0 : index
    %c0_0 = arith.constant 0 : index
    %0 = vector.load %arg1[%c0, %c0_0] : memref<8x784xf32, #tpu.memory_space<vmem>>, vector<8x784xf32>
    %1 = arith.truncf %0 : vector<8x784xf32> to vector<8x784xbf16>
    %c0_1 = arith.constant 0 : index
    %c0_2 = arith.constant 0 : index
    %2 = vector.load %arg2[%c0_1, %c0_2] : memref<784x128xbf16, #tpu.memory_space<vmem>>, vector<784x128xbf16>
    %cst = arith.constant dense<0.000000e+00> : vector<8x128xf32>
    %3 = tpu.matmul %1, %2, %cst {dimension_numbers = #tpu.dot_dimension_numbers<[1], [0], [0], [1], [0, 0, 1, 1], [], []>} : vector<8x784xbf16>, vector<784x128xbf16>, vector<8x128xf32> -> vector<8x128xf32>
    %4 = arith.truncf %3 : vector<8x128xf32> to vector<8x128xbf16>
    %c0_3 = arith.constant 0 : index
    %c0_4 = arith.constant 0 : index
    %5 = vector.load %arg3[%c0_3, %c0_4] : memref<8x128xbf16, #tpu.memory_space<vmem>>, vector<8x128xbf16>
    tpu.vector_store %arg3[%c0_3, %c0_4], %4 {strides = array<i32>} : memref<8x128xbf16, #tpu.memory_space<vmem>>, vector<8x128xbf16>,
    return
  }
  func.func @transform_0(%arg0: i32) -> (i32, i32) {
    %c0_i32 = arith.constant 0 : i32
    %c0_i32_0 = arith.constant 0 : i32
    return %arg0, %c0_i32 : i32, i32
  }
  func.func @transform_1(%arg0: i32) -> (i32, i32) {
    %c0_i32 = arith.constant 0 : i32
    %c0_i32_0 = arith.constant 0 : i32
    %c0_i32_1 = arith.constant 0 : i32
    return %c0_i32, %c0_i32_0 : i32, i32
  }
  func.func @transform_2(%arg0: i32) -> (i32, i32) {
    %c0_i32 = arith.constant 0 : i32
    %c0_i32_0 = arith.constant 0 : i32
    return %arg0, %c0_i32 : i32, i32
  }
}

</mosaic_0001>

<bundles_post_ra>
// kernel: linear_hidden_forward.1
= control target key start
LH: loop header
LB: loop body
LE: loop exit
PB: predicated region body
PF: predicated region fallthrough
CT: control target
= control target key end

     0   :  { %7 = vsyncpa [#allocation3], 0  ;;  %s881_s0 = inlined_call_operand.hbm [shape: f32[8,784], index: 0, kind: input, shape index: {}]   ;;  %s882_s1 = inlined_call_operand.hbm [shape: bf16[784,128], index: 1, kind: input, shape index: {}]   ;;  %s883_s2 = inlined_call_operand.vmem [shape: bf16[8,128], index: 2, kind: output, shape index: {}]  }
   0x1   :  { %s14_s11 = sshll.u32 %s881_s0, 4  ;;  %s15_s11 = int_to_ptr.hbm [resolvable:$true] %s14_s11 }
   0x2   :  { %8 = vsyncpa [#allocation5], 0  ;;  %s853_s12 = smov [#allocation2]   ;;  %s24_s16 = sshll.u32 %s882_s1, 4  ;;  %s25_s16 = int_to_ptr.hbm [resolvable:$true] %s24_s16 }
   0x3   :  { %s16_s13 = sshll.u32 %s853_s12, 4  ;;  %s854_s17 = smov [#allocation4]   ;;  %s17_s13 = int_to_ptr.vmem [resolvable:$true] %s16_s13 }
   0x4   :  { %19 = dma.hbm_to_vmem [thread:$0]  %s15_s11, 896, %s17_s13, [#allocation3]  }
   0x5   :  { %s26_s18 = sshll.u32 %s854_s17, 4  ;;  %s855_s19 = smov 64   ;;  %s27_s18 = int_to_ptr.vmem [resolvable:$true] %s26_s18 }
   0x6   :  { %s856_s20 = smov 4  }
   0x7   :  { %32 = dma.hbm_to_vmem [thread:$0]  %s25_s16, 6272, %s27_s18, [#allocation5], %s855_s19, %s855_s19, %s856_s20  }
   0x8   :  { %849 = dma.done.wait [#allocation3], 896  }
   0x9   :  { %850 = vsyncadd [#allocation3], 4294966400 }
   0xa   :  { %851 = dma.done.wait [#allocation5], 6272  }
   0xb   :  { %852 = vsyncadd [#allocation5], 4294961024  ;;  %v755_v0 = vld [vmem:[#allocation4 + $0x38] sm:$0xff]  ;;  %v754_v3 = vld [vmem:[#allocation4 + $0x30] sm:$0xff]  ;;  %vm448_vm0 = vcmask 130048  }
   0xc   :  { %v763_v1 = vld [vmem:[#allocation4 + $0x78] sm:$0xff]  ;;  %452 = vmatpush.bf16.msra.mxu0 %v755_v0  ;;  %v762_v4 = vld [vmem:[#allocation4 + $0x70] sm:$0xff]  ;;  %v753_v8 = vld [vmem:[#allocation4 + $0x28] sm:$0xff] }
   0xd   :  { %v771_v2 = vld [vmem:[#allocation4 + $0xb8] sm:$0xff]  ;;  %465 = vmatpush.bf16.msra.mxu1 %v763_v1  ;;  %v770_v5 = vld [vmem:[#allocation4 + $0xb0] sm:$0xff]  ;;  %v761_v9 = vld [vmem:[#allocation4 + $0x68] sm:$0xff] }
   0xe   :  { %478 = vmatpush.bf16.msra.mxu2 %v771_v2  ;;  %v779_v6 = vld [vmem:[#allocation4 + $0xf8] sm:$0xff]  ;;  %v778_v7 = vld [vmem:[#allocation4 + $0xf0] sm:$0xff]  ;;  %v769_v10 = vld [vmem:[#allocation4 + $0xa8] sm:$0xff] }
   0xf   :  { %491 = vmatpush.bf16.msra.mxu3 %v779_v6  ;;  %v777_v11 = vld [vmem:[#allocation4 + $0xe8] sm:$0xff]  ;;  %v752_v12 = vld [vmem:[#allocation4 + $0x20] sm:$0xff]  ;;  %v751_v16 = vld [vmem:[#allocation4 + $0x18] sm:$0xff] }
  0x10   :  { %453 = vmatpush.bf16.msra.mxu0 %v754_v3  ;;  %v760_v13 = vld [vmem:[#allocation4 + $0x60] sm:$0xff]  ;;  %v759_v17 = vld [vmem:[#allocation4 + $0x58] sm:$0xff]  ;;  %v750_v20 = vld [vmem:[#allocation4 + $0x10] sm:$0xff] }
  0x11   :  { %466 = vmatpush.bf16.msra.mxu1 %v762_v4  ;;  %v768_v14 = vld [vmem:[#allocation4 + $0xa0] sm:$0xff]  ;;  %v767_v18 = vld [vmem:[#allocation4 + $0x98] sm:$0xff]  ;;  %v758_v21 = vld [vmem:[#allocation4 + $0x50] sm:$0xff] }
  0x12   :  { %479 = vmatpush.bf16.msra.mxu2 %v770_v5  ;;  %v776_v15 = vld [vmem:[#allocation4 + $0xe0] sm:$0xff]  ;;  %v775_v19 = vld [vmem:[#allocation4 + $0xd8] sm:$0xff]  ;;  %v766_v22 = vld [vmem:[#allocation4 + $0x90] sm:$0xff] }
  0x13   :  { %492 = vmatpush.bf16.msra.mxu3 %v778_v7  ;;  %v774_v23 = vld [vmem:[#allocation4 + $0xd0] sm:$0xff]  ;;  %v749_v24 = vld [vmem:[#allocation4 + $0x8] sm:$0xff]  ;;  %v748_v27 = vld [vmem:[#allocation4] sm:$0xff] }
  0x14   :  { %454 = vmatpush.bf16.msra.mxu0 %v753_v8  ;;  %v757_v25 = vld [vmem:[#allocation4 + $0x48] sm:$0xff]  ;;  %v756_v29 = vld [vmem:[#allocation4 + $0x40] sm:$0xff]  ;;  %v43_v31 = vld [vmem:[#allocation2 + $0x8] sm:$0xff] }
  0x15   :  { %467 = vmatpush.bf16.msra.mxu1 %v761_v9  ;;  %v765_v26 = vld [vmem:[#allocation4 + $0x88] sm:$0xff]  ;;  %v764_v32 = vld [vmem:[#allocation4 + $0x80] sm:$0xff]  ;;  %v787_v33 = vld [vmem:[#allocation4 + $0x138] sm:$0xff]  ;;  %v50_v38 = vpack.c.bf16 %v43_v31, %v43_v31 }
  0x16   :  { %480 = vmatpush.bf16.msra.mxu2 %v769_v10  ;;  %v773_v28 = vld [vmem:[#allocation4 + $0xc8] sm:$0xff]  ;;  %v44_v34 = vld [vmem:[#allocation2 + $0x10] sm:$0xff]  ;;  %v796_v36 = vld [vmem:[#allocation4 + $0x180] sm:$0xff] }
  0x17   :  { %493 = vmatpush.bf16.msra.mxu3 %v777_v11  ;;  %v42_v30 = vld [vmem:[#allocation2] sm:$0xff]  ;;  %v795_v35 = vld [vmem:[#allocation4 + $0x178] sm:$0xff]  ;;  %v51_v39 = vpack.c.bf16 %v44_v34, %v44_v34  ;;  %v772_v40 = vld [vmem:[#allocation4 + $0xc0] sm:$0xff] }
  0x18   :  { %455 = vmatpush.bf16.msra.mxu0 %v752_v12  ;;  %v49_v37 = vpack.c.bf16 %v42_v30, %v42_v30  ;;  %v45_v41 = vld [vmem:[#allocation2 + $0x18] sm:$0xff]  ;;  %v786_v42 = vld [vmem:[#allocation4 + $0x130] sm:$0xff]  ;;  %v785_v45 = vld [vmem:[#allocation4 + $0x128] sm:$0xff] }
  0x19   :  { %468 = vmatpush.bf16.msra.mxu1 %v760_v13  ;;  %v794_v43 = vld [vmem:[#allocation4 + $0x170] sm:$0xff]  ;;  %v52_v44 = vpack.c.bf16 %v45_v41, %v45_v41  ;;  %v793_v46 = vld [vmem:[#allocation4 + $0x168] sm:$0xff]  ;;  %v784_v47 = vld [vmem:[#allocation4 + $0x120] sm:$0xff] }
  0x1a   :  { %481 = vmatpush.bf16.msra.mxu2 %v768_v14  ;;  %v792_v48 = vld [vmem:[#allocation4 + $0x160] sm:$0xff]  ;;  %v783_v49 = vld [vmem:[#allocation4 + $0x118] sm:$0xff]  ;;  %v782_v53 = vld [vmem:[#allocation4 + $0x110] sm:$0xff] }
  0x1b   :  { %494 = vmatpush.bf16.msra.mxu3 %v776_v15  ;;  %v48_v50 = vld [vmem:[#allocation2 + $0x30] sm:$0xff]  ;;  %v790_v54 = vld [vmem:[#allocation4 + $0x150] sm:$0xff]  ;;  %v781_v55 = vld [vmem:[#allocation4 + $0x108] sm:$0xff] }
  0x1c   :  { %456 = vmatpush.bf16.msra.mxu0 %v751_v16  ;;  %v791_v51 = vld [vmem:[#allocation4 + $0x158] sm:$0xff]  ;;  %v55_v52 = vpack.c.bf16 %v48_v50, %v48_v50  ;;  %v789_v56 = vld [vmem:[#allocation4 + $0x148] sm:$0xff]  ;;  %v780_v57 = vld [vmem:[#allocation4 + $0x100] sm:$0xff] }
  0x1d   :  { %469 = vmatpush.bf16.msra.mxu1 %v759_v17  ;;  %v46_v58 = vld [vmem:[#allocation2 + $0x20] sm:$0xff]  ;;  %v788_v59 = vld [vmem:[#allocation4 + $0x140] sm:$0xff]  ;;  %v47_v60 = vld [vmem:[#allocation2 + $0x28] sm:$0xff] }
  0x1e   :  { %482 = vmatpush.bf16.msra.mxu2 %v767_v18  ;;  %v53_v61 = vpack.c.bf16 %v46_v58, %v46_v58  ;;  %v54_v62 = vpack.c.bf16 %v47_v60, %v47_v60 }
  0x1f   :  { %495 = vmatpush.bf16.msra.mxu3 %v775_v19 }
  0x20   :  { %457 = vmatpush.bf16.msra.mxu0 %v750_v20 }
  0x21   :  { %470 = vmatpush.bf16.msra.mxu1 %v758_v21 }
  0x22   :  { %483 = vmatpush.bf16.msra.mxu2 %v766_v22 }
  0x23   :  { %496 = vmatpush.bf16.msra.mxu3 %v774_v23 }
  0x24   :  { %458 = vmatpush.bf16.msra.mxu0 %v749_v24 }
  0x25   :  { %471 = vmatpush.bf16.msra.mxu1 %v757_v25 }
  0x26   :  { %484 = vmatpush.bf16.msra.mxu2 %v765_v26 }
  0x27   :  { %497 = vmatpush.bf16.msra.mxu3 %v773_v28 }
  0x28   :  { %459 = vmatpush.bf16.msra.mxu0 %v748_v27 }
  0x29   :  { %472 = vmatpush.bf16.msra.mxu1 %v756_v29 }
  0x2a   :  { %485 = vmatpush.bf16.msra.mxu2 %v764_v32 }
  0x2b   :  { %460 = vmatmul.bf16.vlgmr.msra.gmra.mxu0 %v49_v37  ;;  %498 = vmatpush.bf16.msra.mxu3 %v772_v40 }
  0x2c   :  { %504 = vmatpush.bf16.msrb.mxu0 %v787_v33  ;;  %473 = vmatmul.bf16.vlgmr.msra.gmra.mxu1 %v50_v38 }
  0x2d   :  { %517 = vmatpush.bf16.msrb.mxu1 %v795_v35  ;;  %486 = vmatmul.bf16.vlgmr.msra.gmra.mxu2 %v51_v39 }
  0x2e   :  { %537 = vmatpush.bf16.msrb.mxu2 %v796_v36  ;;  %499 = vmatmul.bf16.vlgmr.msra.gmra.mxu3 %v52_v44 }
  0x30   :  { %505 = vmatpush.bf16.msrb.mxu0 %v786_v42 }
  0x31   :  { %518 = vmatpush.bf16.msrb.mxu1 %v794_v43 }
  0x34   :  { %506 = vmatpush.bf16.msrb.mxu0 %v785_v45 }
  0x35   :  { %519 = vmatpush.bf16.msrb.mxu1 %v793_v46 }
  0x38   :  { %507 = vmatpush.bf16.msrb.mxu0 %v784_v47 }
  0x39   :  { %520 = vmatpush.bf16.msrb.mxu1 %v792_v48 }
  0x3c   :  { %508 = vmatpush.bf16.msrb.mxu0 %v783_v49 }
  0x3d   :  { %521 = vmatpush.bf16.msrb.mxu1 %v791_v51  ;;  %747 = vmatmul.msk.bf16.vlgmr.msrb.gmra.mxu2 %vm448_vm0, %v55_v52 }
  0x40   :  { %509 = vmatpush.bf16.msrb.mxu0 %v782_v53 }
  0x41   :  { %522 = vmatpush.bf16.msrb.mxu1 %v790_v54 }
  0x44   :  { %510 = vmatpush.bf16.msrb.mxu0 %v781_v55 }
  0x45   :  { %523 = vmatpush.bf16.msrb.mxu1 %v789_v56 }
  0x48   :  { %511 = vmatpush.bf16.msrb.mxu0 %v780_v57 }
  0x49   :  { %524 = vmatpush.bf16.msrb.mxu1 %v788_v59 }
  0x4b   :  { %512 = vmatmul.bf16.vlgmr.msrb.gmra.mxu0 %v53_v61 }
  0x4c   :  { %525 = vmatmul.bf16.vlgmr.msrb.gmra.mxu1 %v54_v62 }
  0xa8   :  { %v461_v63 = vpop.f32.mrf.mxu0 }
  0xa9   :  { %v474_v0 = vpop.f32.mrf.mxu1 }
  0xaa   :  { %v475_v7 = vadd.f32 %v474_v0, %v461_v63 }
  0xb0   :  { %v487_v1 = vpop.f32.mrf.mxu2  ;;  %v463_v2 = vpop.f32.mrf.mxu0 }
  0xb1   :  { %v476_v3 = vpop.f32.mrf.mxu1  ;;  %v500_v4 = vpop.f32.mrf.mxu3  ;;  %v488_v9 = vadd.f32 %v487_v1, %v475_v7 }
  0xb3   :  { %v501_v10 = vadd.f32 %v500_v4, %v488_v9 }
  0xb8   :  { %v489_v5 = vpop.f32.mrf.mxu2 }
  0xb9   :  { %v502_v6 = vpop.f32.mrf.mxu3 }
  0xc0   :  { %v539_v8 = vpop.f32.mrf.mxu2 }
  0xc8   :  { %v513_v11 = vpop.f32.mrf.mxu0  ;;  %v541_v14 = vpop.f32.mrf.mxu2 }
  0xc9   :  { %v514_v12 = vadd.f32 %v513_v11, %v501_v10  ;;  %v526_v13 = vpop.f32.mrf.mxu1 }
  0xcb   :  { %v527_v15 = vadd.f32 %v526_v13, %v514_v12 }
  0xcd   :  { %v540_v16 = vadd.f32 %v539_v8, %v527_v15 }
  0xcf   :  { %v543_v17 = vpack.c.bf16 %v540_v16, %v540_v16 }
  0xd0   :  { %v515_v18 = vpop.f32.mrf.mxu0 }
  0xd1   :  { %544 = vst [vmem:[%s883_s2] sm:$0xf] %v543_v17  ;;  %v528_v19 = vpop.f32.mrf.mxu1 }
  0xd2   :  { %549 = vsyncpa [#allocation3], 1 }
  0xd3   :  { %550 = vsyncpa [#allocation5], 1 }

</bundles_post_ra>
